<compile_context>
chip_gen: v7x
topology: tpu7x:2x2x1
jax: 0.10.0
libtpu: 0.0.40
codegen_flags: <defaults>
</compile_context>

<pallas_src>
import math

import jax
import jax.numpy as jnp
from jax.experimental import pallas as pl
from jax.experimental.pallas import tpu as pltpu


def _round_up(n, m):
    return ((n + m - 1) // m) * m


def vnet_kernel(x_ref, w1_ref, b1_ref, w2_ref, b2_ref, o_ref):
    x = x_ref[...]
    w1 = w1_ref[...]
    if x.dtype != w1.dtype:
        # Streaming cast of the x tile only (w1 was cast once in the wrapper).
        x = x.astype(w1.dtype)

    # ---- Layer 1: Linear(D -> H) + ReLU (MXU matmul, f32 accumulation) ----
    h = jnp.dot(x, w1, preferred_element_type=jnp.float32) + b1_ref[...]
    h = jnp.maximum(h, 0.0)                                    # (TB, H) f32

    # ---- Layer 2: Linear(H -> 1) as VPU multiply + cross-lane (XLU) reduce ----
    # w2_ref is (1, H) f32; b2 is a scalar in SMEM.
    out = jnp.sum(h * w2_ref[...], axis=-1, keepdims=True) + b2_ref[0]   # (TB, 1)
    o_ref[...] = out.astype(o_ref.dtype)


def vnetwork_forward(
    x, w1, b1, w2, b2, *,
    block_b=4096,
    matmul_dtype=None,            # e.g. jnp.bfloat16 for the native MXU fast path
    vmem_budget_bytes=12 * 1024 * 1024,
    single_buffer_weights=None,   # None -> auto (True when w1 >= 4 MiB)
    vmem_limit_bytes=None,        # optionally raise the scoped-VMEM limit
):
    """x: (B, D); w1: (D, H); b1: (H,)/(1,H); w2: (H,1)/(1,H)/(H,); b2: scalar-like."""
    B, D = x.shape
    H = w1.shape[1]

    # One-time wrapper cast of the grid-invariant weight for the bf16 MXU feed.
    if matmul_dtype is not None:
        w1 = w1.astype(matmul_dtype)

    x_bytes = jnp.dtype(x.dtype).itemsize
    w_bytes = jnp.dtype(w1.dtype).itemsize

    # Elementwise path stays f32 on all generations (no bf16 VPU on v5e).
    b1_row = jnp.asarray(b1, jnp.float32).reshape(1, H)
    w2_row = jnp.asarray(w2, jnp.float32).reshape(1, H)
    b2_s = jnp.asarray(b2, jnp.float32).reshape(1)            # scalar -> SMEM

    # ---- Batch-tile selection (D/H-aware VMEM budget, no padding of x) ----
    if B <= 8:
        TB = B                                    # block == full batch dim (allowed)
    else:
        budget = vmem_budget_bytes
        if vmem_limit_bytes is not None:
            budget = int(0.75 * vmem_limit_bytes)
        # Per-row VMEM: x double-buffer + out double-buffer + ~3 f32 H-wide temps.
        per_row = 2 * D * x_bytes + 2 * 4 + 3 * H * 4
        # Fixed: weights (worst-case double-buffered) + biases + slack.
        fixed = 2 * D * H * w_bytes + 4 * H * 4 + 4096
        avail = max(budget - fixed, 8 * per_row)
        TB = min(block_b, avail // per_row, _round_up(B, 8))
        TB = max(8, (TB // 8) * 8)
        # v7x has 2 TensorCores: ensure at least 2 "parallel" grid steps when possible.
        if pl.cdiv(B, TB) < 2 and B >= 16:
            TB = max(8, _round_up(pl.cdiv(B, 2), 8))
    G = pl.cdiv(B, TB)

    # Single-buffer grid-invariant weights only when they are big enough to matter.
    if single_buffer_weights is None:
        single_buffer_weights = (D * H * w_bytes) >= (4 << 20)

    def _inv_spec(shape):
        if single_buffer_weights:
            return pl.BlockSpec(shape, lambda i: (0, 0), pipeline_mode=pl.Buffered(1))
        return pl.BlockSpec(shape, lambda i: (0, 0))

    cost = pl.CostEstimate(
        flops=2 * B * D * H + 4 * B * H,
        transcendentals=0,
        bytes_accessed=B * D * x_bytes + D * H * w_bytes + 2 * H * 4 + 4 + B * 4,
    )

    cparams = dict(dimension_semantics=("parallel",))
    if vmem_limit_bytes is not None:
        cparams["vmem_limit_bytes"] = int(vmem_limit_bytes)

    out = pl.pallas_call(
        vnet_kernel,
        out_shape=jax.ShapeDtypeStruct((B, 1), x.dtype),
        grid_spec=pl.GridSpec(
            grid=(G,),
            in_specs=[
                pl.BlockSpec((TB, D), lambda i: (i, 0)),             # x: streamed over batch
                _inv_spec((D, H)),                                   # w1: VMEM-resident
                _inv_spec((1, H)),                                   # b1: VMEM-resident
                _inv_spec((1, H)),                                   # w2 row: VMEM-resident
                pl.BlockSpec(memory_space=pltpu.MemorySpace.SMEM),   # b2 scalar
            ],
            out_specs=pl.BlockSpec((TB, 1), lambda i: (i, 0)),
        ),
        compiler_params=pltpu.CompilerParams(**cparams),
        cost_estimate=cost,
    )(x, w1, b1_row, w2_row, b2_s)

    return out


# ---------------- parameter init (matches the PyTorch module) ----------------

def xavier_uniform(key, fan_in, fan_out, dtype=jnp.float32):
    # torch.nn.init.xavier_uniform_ bound = sqrt(6 / (fan_in + fan_out)).
    bound = math.sqrt(6.0 / (fan_in + fan_out))
    return jax.random.uniform(
        key, (fan_in, fan_out), dtype=dtype, minval=-bound, maxval=bound
    )


def init_vnetwork_params(key, input_size, hidden=256, dtype=jnp.float32):
    k1, k2 = jax.random.split(key)
    w1 = xavier_uniform(k1, input_size, hidden, dtype)   # stored (in, out)
    b1 = jnp.zeros((1, hidden), dtype)                   # init.constant_(bias, 0)
    w2 = xavier_uniform(k2, hidden, 1, dtype)
    b2 = jnp.zeros((1, 1), dtype)
    return w1, b1, w2, b2


def reference_forward(x, w1, b1, w2, b2):
    h = jnp.maximum(x @ w1 + b1, 0.0)
    return h @ w2 + b2


if __name__ == "__main__":
    key = jax.random.PRNGKey(0)
    k_param, k_x = jax.random.split(key)

    batch = 8
    input_size = 32

    w1, b1, w2, b2 = init_vnetwork_params(k_param, input_size)
    x = jax.random.normal(k_x, (batch, input_size), dtype=jnp.float32)
    ref = reference_forward(x, w1, b1, w2, b2)

    # f32 path: matches PyTorch float32 module semantics exactly.
    out = jax.block_until_ready(vnetwork_forward(x, w1, b1, w2, b2))
    assert out.shape == (batch, 1), out.shape
    assert jnp.allclose(out, ref, atol=1e-5, rtol=1e-5), (out, ref)

    # bf16 MXU-feed perf path (w1 cast once in the wrapper, f32 accumulation).
    out_bf16 = jax.block_until_ready(
        vnetwork_forward(x, w1, b1, w2, b2, matmul_dtype=jnp.bfloat16)
    )
    assert jnp.allclose(out_bf16, ref, atol=5e-2, rtol=5e-2), (out_bf16, ref)

    # Ragged batch (B not a multiple of the tile): exercises the partial-last-block
    # path (no jnp.pad copy anywhere) and a multi-step "parallel" grid.
    xb = jax.random.normal(jax.random.PRNGKey(1), (40, input_size), jnp.float32)
    outb = jax.block_until_ready(vnetwork_forward(xb, w1, b1, w2, b2, block_b=16))
    refb = reference_forward(xb, w1, b1, w2, b2)
    assert outb.shape == (40, 1), outb.shape
    assert jnp.allclose(outb, refb, atol=1e-5, rtol=1e-5), (outb, refb)

    print("KERNEL_OK")
</pallas_src>

<mosaic_0001>
module attributes {stable_mosaic.version = 11 : i64} {
  func.func @vnet_kernel(%arg0: i32, %arg1: memref<8x32xf32, #tpu.memory_space<vmem>>, %arg2: memref<32x256xf32, #tpu.memory_space<vmem>>, %arg3: memref<1x256xf32, #tpu.memory_space<vmem>>, %arg4: memref<1x256xf32, #tpu.memory_space<vmem>>, %arg5: memref<1xf32, #tpu.memory_space<smem>>, %arg6: memref<8x1xf32, #tpu.memory_space<vmem>>) attributes {dimension_semantics = [#tpu.dimension_semantics<parallel>], iteration_bounds = array<i64: 1>, scalar_prefetch = 0 : i64, scratch_operands = 0 : i64, tpu.core_type = #tpu.core_type<tc>, window_params = [{transform_indices = @transform_0, window_bounds = array<i64: 8, 32>}, {pipeline_mode = #tpu.pipeline_mode<synchronous>, transform_indices = @transform_1, window_bounds = array<i64: 32, 256>}, {pipeline_mode = #tpu.pipeline_mode<synchronous>, transform_indices = @transform_2, window_bounds = array<i64: 1, 256>}, {pipeline_mode = #tpu.pipeline_mode<synchronous>, transform_indices = @transform_3, window_bounds = array<i64: 1, 256>}, {transform_indices = @transform_4, window_bounds = array<i64: 1>}, {transform_indices = @transform_5, window_bounds = array<i64: 8, 1>}]} {
    %c0 = arith.constant 0 : index
    %c0_0 = arith.constant 0 : index
    %0 = vector.load %arg1[%c0, %c0_0] : memref<8x32xf32, #tpu.memory_space<vmem>>, vector<8x32xf32>
    %c0_1 = arith.constant 0 : index
    %c0_2 = arith.constant 0 : index
    %1 = vector.load %arg2[%c0_1, %c0_2] : memref<32x256xf32, #tpu.memory_space<vmem>>, vector<32x256xf32>
    %cst = arith.constant dense<0.000000e+00> : vector<8x256xf32>
    %2 = tpu.matmul %0, %1, %cst {dimension_numbers = #tpu.dot_dimension_numbers<[1], [0], [0], [1], [0, 0, 1, 1], [], []>} : vector<8x32xf32>, vector<32x256xf32>, vector<8x256xf32> -> vector<8x256xf32>
    %c0_3 = arith.constant 0 : index
    %c0_4 = arith.constant 0 : index
    %3 = vector.load %arg3[%c0_3, %c0_4] : memref<1x256xf32, #tpu.memory_space<vmem>>, vector<1x256xf32>
    %4 = vector.broadcast %3 : vector<1x256xf32> to vector<8x256xf32>
    %5 = arith.addf %2, %4 : vector<8x256xf32>
    %cst_5 = arith.constant 0.000000e+00 : f32
    %6 = vector.broadcast %cst_5 : f32 to vector<8x256xf32>
    %7 = arith.maximumf %5, %6 : vector<8x256xf32>
    %c0_6 = arith.constant 0 : index
    %c0_7 = arith.constant 0 : index
    %8 = vector.load %arg4[%c0_6, %c0_7] : memref<1x256xf32, #tpu.memory_space<vmem>>, vector<1x256xf32>
    %9 = vector.broadcast %8 : vector<1x256xf32> to vector<8x256xf32>
    %10 = arith.mulf %7, %9 : vector<8x256xf32>
    %cst_8 = arith.constant dense<0.000000e+00> : vector<8xf32>
    %11 = vector.multi_reduction <add>, %10, %cst_8 [1] : vector<8x256xf32> to vector<8xf32>
    %12 = vector.shape_cast %11 : vector<8xf32> to vector<8x1xf32>
    %c0_9 = arith.constant 0 : index
    %13 = memref.load %arg5[%c0_9] : memref<1xf32, #tpu.memory_space<smem>>
    %14 = vector.broadcast %13 : f32 to vector<8x1xf32>
    %15 = arith.addf %12, %14 : vector<8x1xf32>
    %c0_10 = arith.constant 0 : index
    %c0_11 = arith.constant 0 : index
    %16 = vector.load %arg6[%c0_10, %c0_11] : memref<8x1xf32, #tpu.memory_space<vmem>>, vector<8x1xf32>
    tpu.vector_store %arg6[%c0_10, %c0_11], %15 {strides = array<i32>} : memref<8x1xf32, #tpu.memory_space<vmem>>, vector<8x1xf32>,
    return
  }
  func.func @transform_0(%arg0: i32) -> (i32, i32) {
    %c0_i32 = arith.constant 0 : i32
    %c0_i32_0 = arith.constant 0 : i32
    return %arg0, %c0_i32 : i32, i32
  }
  func.func @transform_1(%arg0: i32) -> (i32, i32) {
    %c0_i32 = arith.constant 0 : i32
    %c0_i32_0 = arith.constant 0 : i32
    %c0_i32_1 = arith.constant 0 : i32
    return %c0_i32, %c0_i32_0 : i32, i32
  }
  func.func @transform_2(%arg0: i32) -> (i32, i32) {
    %c0_i32 = arith.constant 0 : i32
    %c0_i32_0 = arith.constant 0 : i32
    %c0_i32_1 = arith.constant 0 : i32
    return %c0_i32, %c0_i32_0 : i32, i32
  }
  func.func @transform_3(%arg0: i32) -> (i32, i32) {
    %c0_i32 = arith.constant 0 : i32
    %c0_i32_0 = arith.constant 0 : i32
    %c0_i32_1 = arith.constant 0 : i32
    return %c0_i32, %c0_i32_0 : i32, i32
  }
  func.func @transform_4(%arg0: i32) -> i32 {
    %c0_i32 = arith.constant 0 : i32
    %c0_i32_0 = arith.constant 0 : i32
    return %c0_i32 : i32
  }
  func.func @transform_5(%arg0: i32) -> (i32, i32) {
    %c0_i32 = arith.constant 0 : i32
    %c0_i32_0 = arith.constant 0 : i32
    return %arg0, %c0_i32 : i32, i32
  }
}

</mosaic_0001>

<bundles_post_ra>
// kernel: tpu_custom_call.1
= control target key start
LH: loop header
LB: loop body
LE: loop exit
PB: predicated region body
PF: predicated region fallthrough
CT: control target
= control target key end

     0   :  { %11 = vsyncpa [#allocation4], 0  ;;  %s313_s0 = inlined_call_operand.hbm [shape: f32[8,32], index: 0, kind: input, shape index: {}]   ;;  %s314_s1 = inlined_call_operand.hbm [shape: f32[32,256], index: 1, kind: input, shape index: {}]   ;;  %s315_s2 = inlined_call_operand.vmem [shape: f32[1,256], index: 2, kind: input, shape index: {}]   ;;  %s316_s3 = inlined_call_operand.vmem [shape: f32[1,256], index: 3, kind: input, shape index: {}]   ;;  %s317_s4 = inlined_call_operand.<no memory space> [shape: f32[1], index: 4, kind: input, shape index: {}]   ;;  %s318_s5 = inlined_call_operand.vmem [shape: f32[8,1], index: 5, kind: output, shape index: {}]  }
   0x1   :  { %12 = vsyncpa [#allocation6], 0  ;;  %s235_s18 = smov [#allocation3]   ;;  %s236_s20 = smov [#allocation5]  }
   0x2   :  { %s19_s19 = sshll.u32 %s235_s18, 4  ;;  %s28_s21 = sshll.u32 %s236_s20, 4  ;;  %s20_s19 = int_to_ptr.vmem [resolvable:$true] %s19_s19  ;;  %s270_s21 = int_to_ptr.vmem [resolvable:$true] %s28_s21 }
   0x3   :  { %s187_s24 = scalar_lea.hbm %s313_s0, 128 }
   0x4   :  { %p188_p0 = scmp.ne.s32.totalorder %s313_s0, %s187_s24  ;;  %p191_p1 = scmp.lt.u32.totalorder %s187_s24, %s313_s0 }
   0x6   :  { %p193_p2 = pnand %p191_p1, %p188_p0 }
   0x8   :  { %196 = shalt.err (!%p193_p2)
}
   0x9   :  { %s197_s29 = scalar_lea.vmem %s20_s19, 128  ;;  %p202_p4 = scmp.lt.s32.totalorder %s20_s19, %s20_s19 }
   0xa   :  { %p198_p3 = scmp.ne.s32.totalorder %s20_s19, %s197_s29  ;;  %p203_p5 = scmp.lt.s32.totalorder %s197_s29, %s197_s29 }
   0xc   :  { %p204_p6 = por %p203_p5, %p202_p4 }
   0xe   :  { %p205_p7 = pnand %p204_p6, %p198_p3 }
  0x10   :  { %208 = shalt.err (!%p205_p7)
}
  0x11   :  { %22 = dma.hbm_to_vmem [thread:$0]  %s313_s0, 128, %s20_s19, [#allocation4]  }
  0x12   :  { %s209_s9 = scalar_lea.hbm %s314_s1, 1024 }
  0x13   :  { %p210_p8 = scmp.ne.s32.totalorder %s314_s1, %s209_s9  ;;  %p213_p9 = scmp.lt.u32.totalorder %s209_s9, %s314_s1 }
  0x15   :  { %p215_p10 = pnand %p213_p9, %p210_p8 }
  0x17   :  { %218 = shalt.err (!%p215_p10)
}
  0x18   :  { %s219_s14 = scalar_lea.vmem %s270_s21, 1024  ;;  %p224_p12 = scmp.lt.s32.totalorder %s270_s21, %s270_s21 }
  0x19   :  { %p220_p11 = scmp.ne.s32.totalorder %s270_s21, %s219_s14  ;;  %p225_p13 = scmp.lt.s32.totalorder %s219_s14, %s219_s14 }
  0x1b   :  { %p226_p0 = por %p225_p13, %p224_p12 }
  0x1d   :  { %p227_p1 = pnand %p226_p0, %p220_p11 }
  0x1f   :  { %230 = shalt.err (!%p227_p1)
}
  0x20   :  { %s237_s0 = smov 256   ;;  %s238_s15 = smov 16  }
  0x21   :  { %34 = dma.hbm_to_vmem [thread:$0]  %s314_s1, 1024, %s270_s21, [#allocation6], %s237_s0, %s237_s0, %s238_s15  }
  0x22   :  { %231 = dma.done.wait [#allocation4], 128  }
  0x23   :  { %232 = vsyncadd [#allocation4], 4294967168 }
  0x24   :  { %233 = dma.done.wait [#allocation6], 1024  }
  0x25   :  { %234 = vsyncadd [#allocation6], 4294966272  ;;  %v239_v0 = vmov 0.0   ;;  %v49_v1 = vld [vmem:[#allocation5 + $0x8] sm:$0xff]  ;;  %v51_v2 = vld [vmem:[#allocation5 + $0x18] sm:$0xff]  ;;  %vm68_vm0 = vcmask 261120   ;;  %v58_v14 = vlaneseq  ;;  %v163_v33 = vstv %s317_s4 }
  0x26   :  { %136 = vmatprep.mubr.f32.mxu0 %v239_v0  ;;  %v48_v3 = vld [vmem:[#allocation5] sm:$0xff]  ;;  %v174_v4 = vpack.c.bf16 %v51_v2, %v49_v1  ;;  %v50_v5 = vld [vmem:[#allocation5 + $0x10] sm:$0xff]  ;;  %v53_v6 = vld [vmem:[#allocation5 + $0x28] sm:$0xff]  ;;  %vm165_vm1 = vcmask 7168  }
  0x27   :  { %v55_v7 = vld [vmem:[#allocation5 + $0x38] sm:$0xff]  ;;  %v176_v8 = vpack.c.bf16 %v50_v5, %v48_v3  ;;  %v52_v10 = vld [vmem:[#allocation5 + $0x20] sm:$0xff]  ;;  %v54_v11 = vld [vmem:[#allocation5 + $0x30] sm:$0xff]  ;;  %v59_v15 = vshrl.u32 %v58_v14, 7 }
  0x28   :  { %v178_v9 = vpack.c.bf16 %v55_v7, %v53_v6  ;;  %175 = vmatprep.subr.bf16.mxu0 %v174_v4  ;;  %v180_v12 = vpack.c.bf16 %v54_v11, %v52_v10  ;;  %v47_v13 = vld [vmem:[#allocation3] sm:$0xff] }
  0x29   :  { %177 = vmatpush1.bf16.msra.mxu0 %v176_v8  ;;  %v60_v16 = vsub.s32 0, %v59_v15  ;;  %v56_v17 = vld [vmem:[%s315_s2] sm:$0x3]  ;;  %v64_v18 = vsub.s32 1, %v59_v15 }
  0x2a   :  { %179 = vmatprep.subr.bf16.mxu0 %v178_v9  ;;  %v145_v21 = vld [vmem:[%s316_s3] sm:$0x3] }
  0x2b   :  { %v61_v19 = vrot.slane %v56_v17, %v60_v16  ;;  %v65_v20 = vrot.slane %v56_v17, %v64_v18  ;;  %v150_v25 = vrot.slane %v145_v21, %v60_v16  ;;  %v154_v27 = vrot.slane %v145_v21, %v64_v18 }
  0x2d   :  { %181 = vmatpush1.bf16.msra.mxu0 %v180_v12 }
  0x30   :  { %173 = vmatmul.mubr.msk.f32.vlgmr.msra.gmra.mrb[0].mxu0 %vm68_vm0, %v47_v13 }
 0x103   :  { %v138_v22 = vpop.f32.mrb[0].mxu0 }
 0x104   :  { %v139_v23 = vadd.f32 %v138_v22, %v61_v19  ;;  %v140_v24 = vpop.f32.mrb[1].mxu0 }
 0x105   :  { %v141_v26 = vadd.f32 %v140_v24, %v65_v20 }
 0x106   :  { %v143_v28 = vmax.f32 %v139_v23, 0.0 }
 0x107   :  { %v144_v29 = vmax.f32 %v141_v26, 0.0 }
 0x108   :  { %v157_v30 = vmul.f32 %v150_v25, %v143_v28 }
 0x109   :  { %v158_v31 = vmul.f32 %v154_v27, %v144_v29 }
 0x10b   :  { %v159_v32 = vadd.f32 %v158_v31, %v157_v30 }
 0x10d   :  { %160 = vadd.xlane.f32.xlu0 %v159_v32 }
 0x19a   :  { %v161_v34 = vpop.xlane.xlu0 %160 }
 0x19b   :  { %v164_v35 = vadd.f32 %v163_v33, %v161_v34 }
 0x19d   :  { %166 = vst.msk [vmem:[%s318_s5] sm:$0xff] %vm165_vm1, %v164_v35 }
 0x19e   :  { %171 = vsyncpa [#allocation4], 1 }
 0x19f   :  { %172 = vsyncpa [#allocation6], 1 }

</bundles_post_ra>
